<compile_context>
chip_gen: v7x
topology: tpu7x:2x2x1
jax: 0.10.0
libtpu: 0.0.40
codegen_flags: <defaults>
</compile_context>

<pallas_src>
import jax
import jax.numpy as jnp
from jax import lax
from jax.experimental import pallas as pl
from jax.experimental.pallas import tpu as pltpu


def _linear_t_kernel(x_ref, w_ref, b_ref, o_ref):
    # x_ref: (TB, H)  embeddings tile (streamed from HBM)
    # w_ref: (C, H)   weight in PyTorch nn.Linear [out_features, in_features] layout
    # b_ref: (C, 1)   bias column (broadcasts along the lane axis)
    # o_ref: (C, TB)  transposed logits tile -- lane-dense: TB is a 128-multiple
    #                 (or equals the full batch), so stores are unmasked and the
    #                 writeback DMA is a few large contiguous granules.
    acc = lax.dot_general(
        w_ref[...],
        x_ref[...],
        dimension_numbers=(((1,), (1,)), ((), ())),   # W @ X^T on the MXU
        preferred_element_type=jnp.float32,
    )
    o_ref[...] = acc + b_ref[...].astype(jnp.float32)


def _round_up(v, m):
    return -(-v // m) * m


def _vmem_limit_bytes():
    """32 MiB scoped limit on 64-MiB-VMEM parts (v7x), 64 MiB on 128-MiB parts."""
    try:
        phys = int(pltpu.get_tpu_info().vmem_capacity_bytes)
    except Exception:
        phys = 64 * 1024 * 1024          # conservative fallback (v7x per-TC VMEM)
    return (64 if phys >= 128 * 1024 * 1024 else 32) * 1024 * 1024


def _choose_tile_b(B, H, x_dtype, w_dtype, C, vmem_limit, n_buf):
    """Largest 128-multiple batch tile whose *padded* footprint fits VMEM.

    Footprint model (padding-aware, per perf review):
      * embeddings stream: n_buf buffers of tile_b x round_up(H, 128) x itemsize
      * output:            2 buffers of round_up(C, 8) x tile_b x 4 B (f32)
      * weight (resident): 2 buffers of round_up(C, 8) x round_up(H, 128)
      * ~2 MiB headroom for the bias / compiler-internal scratch.
    Batches > 128 always get >= 2 grid steps so the parallel batch axis can
    shard across both TensorCores on v7x.
    """
    itemsize = jnp.dtype(x_dtype).itemsize
    h_pad = _round_up(H, 128)
    out_sub = _round_up(C, 8)
    per_row = n_buf * h_pad * itemsize + 2 * out_sub * 4      # scales with tile_b
    fixed = 2 * out_sub * h_pad * jnp.dtype(w_dtype).itemsize  # resident weight
    fixed += 2 * 1024 * 1024                                   # bias + headroom
    cap = (vmem_limit - fixed) // per_row
    cap = max(128, (cap // 128) * 128)
    cap = min(cap, 2048)

    if B <= 128:
        return B                       # single block: block dims == full array dims
    return min(cap, _round_up(-(-B // 2), 128))   # >= 2 grid steps, 128-aligned


def paraphrase_classifier_forward(embeddings, weight, bias, *, tile_b=None):
    """Forward pass of ParaphraseClassifier.

    embeddings: [B, H]   pooled sentence-pair embeddings
    weight:     [C, H]   nn.Linear weight (PyTorch layout), C = 2
    bias:       [C]      nn.Linear bias
    returns:    [B, C]   f32 logits
    """
    B, H = embeddings.shape
    C = weight.shape[0]
    assert weight.shape[1] == H and bias.shape == (C,)

    vmem_limit = _vmem_limit_bytes()
    n_buf = 3
    if tile_b is None:
        tile_b = _choose_tile_b(B, H, embeddings.dtype, weight.dtype, C,
                                vmem_limit, n_buf)
    if tile_b >= B:
        tile_b = B                     # single block (dims equal full array dims)
    elif tile_b % 128 != 0:
        raise ValueError("tile_b must be a multiple of 128 when smaller than the "
                         "batch (the transposed output tile must be lane-dense)")

    num_tiles = -(-B // tile_b)        # ragged last block handled by Pallas masking
    grid = (num_tiles,)

    # Deeper input pipeline only when there are enough grid steps to use it.
    if num_tiles >= n_buf:
        emb_spec = pl.BlockSpec((tile_b, H), lambda i: (i, 0),
                                pipeline_mode=pl.Buffered(n_buf))
    else:
        emb_spec = pl.BlockSpec((tile_b, H), lambda i: (i, 0))

    x_item = jnp.dtype(embeddings.dtype).itemsize
    w_item = jnp.dtype(weight.dtype).itemsize
    cost = pl.CostEstimate(
        flops=2 * B * H * C,
        transcendentals=0,
        bytes_accessed=B * H * x_item + C * H * w_item + C * B * 4 + C * 4,
    )

    logits_t = pl.pallas_call(
        _linear_t_kernel,
        out_shape=jax.ShapeDtypeStruct((C, B), jnp.float32),   # f32 logits, transposed
        grid_spec=pltpu.PrefetchScalarGridSpec(
            num_scalar_prefetch=0,
            grid=grid,
            in_specs=[
                emb_spec,                                   # streamed embeddings tiles
                pl.BlockSpec((C, H), lambda i: (0, 0)),     # full weight, resident
                pl.BlockSpec((C, 1), lambda i: (0, 0)),     # bias column
            ],
            out_specs=pl.BlockSpec((C, tile_b), lambda i: (0, i)),  # lane-dense tile
        ),
        compiler_params=pltpu.CompilerParams(
            dimension_semantics=("parallel",),   # disjoint batch tiles -> both TCs (v7x)
            vmem_limit_bytes=vmem_limit,
        ),
        cost_estimate=cost,
    )(embeddings, weight, bias.reshape(C, 1))

    # Trivial (2, B) -> (B, 2) transpose in the wrapper (B x 2 x 4 B of traffic).
    return logits_t.T


if __name__ == "__main__":
    # ParaphraseClassifier: nn.Linear(hidden_size, n_class=2). Small config.
    B, H, C = 8, 32, 2
    key = jax.random.PRNGKey(0)
    k_x, k_w, k_b = jax.random.split(key, 3)

    embeddings = jax.random.normal(k_x, (B, H), dtype=jnp.float32)
    weight = jax.random.normal(k_w, (C, H), dtype=jnp.float32) * 0.02
    bias = jax.random.normal(k_b, (C,), dtype=jnp.float32) * 0.02

    # Case 1: tiny batch -> single block (block dims equal full array dims).
    logits = paraphrase_classifier_forward(embeddings, weight, bias)
    jax.block_until_ready(logits)
    ref = embeddings @ weight.T + bias
    assert logits.shape == (B, C) and logits.dtype == jnp.float32
    assert jnp.allclose(logits, ref, atol=1e-5, rtol=1e-5)

    # Case 2: tiled path -- 128-row tiles, 3 grid steps (Buffered(3) pipeline),
    # ragged last block, lane-dense transposed output, 128-aligned hidden size.
    B2, H2 = 300, 128
    k2x, k2w, k2b = jax.random.split(jax.random.PRNGKey(1), 3)
    emb2 = jax.random.normal(k2x, (B2, H2), dtype=jnp.float32)
    w2 = jax.random.normal(k2w, (C, H2), dtype=jnp.float32) * 0.02
    b2 = jax.random.normal(k2b, (C,), dtype=jnp.float32) * 0.02
    logits2 = paraphrase_classifier_forward(emb2, w2, b2, tile_b=128)
    jax.block_until_ready(logits2)
    ref2 = emb2 @ w2.T + b2
    assert logits2.shape == (B2, C)
    assert jnp.allclose(logits2, ref2, atol=1e-4, rtol=1e-4)

    # Case 3: auto tile selection on a larger batch (>= 2 grid steps so the
    # parallel batch axis can shard across both TensorCores on v7x).
    B3 = 512
    emb3 = jax.random.normal(jax.random.PRNGKey(2), (B3, H2), dtype=jnp.float32)
    logits3 = paraphrase_classifier_forward(emb3, w2, b2)
    jax.block_until_ready(logits3)
    ref3 = emb3 @ w2.T + b2
    assert logits3.shape == (B3, C)
    assert jnp.allclose(logits3, ref3, atol=1e-4, rtol=1e-4)

    print("KERNEL_OK")
</pallas_src>

<mosaic_0001>
module attributes {stable_mosaic.version = 11 : i64} {
  func.func @_linear_t_kernel(%arg0: i32, %arg1: memref<8x32xf32, #tpu.memory_space<vmem>>, %arg2: memref<2x32xf32, #tpu.memory_space<vmem>>, %arg3: memref<2x1xf32, #tpu.memory_space<vmem>>, %arg4: memref<2x8xf32, #tpu.memory_space<vmem>>) attributes {dimension_semantics = [#tpu.dimension_semantics<parallel>], iteration_bounds = array<i64: 1>, scalar_prefetch = 0 : i64, scratch_operands = 0 : i64, tpu.core_type = #tpu.core_type<tc>, window_params = [{transform_indices = @transform_0, window_bounds = array<i64: 8, 32>}, {pipeline_mode = #tpu.pipeline_mode<synchronous>, transform_indices = @transform_1, window_bounds = array<i64: 2, 32>}, {pipeline_mode = #tpu.pipeline_mode<synchronous>, transform_indices = @transform_2, window_bounds = array<i64: 2, 1>}, {transform_indices = @transform_3, window_bounds = array<i64: 2, 8>}]} {
    %c0 = arith.constant 0 : index
    %c0_0 = arith.constant 0 : index
    %0 = vector.load %arg2[%c0, %c0_0] : memref<2x32xf32, #tpu.memory_space<vmem>>, vector<2x32xf32>
    %c0_1 = arith.constant 0 : index
    %c0_2 = arith.constant 0 : index
    %1 = vector.load %arg1[%c0_1, %c0_2] : memref<8x32xf32, #tpu.memory_space<vmem>>, vector<8x32xf32>
    %cst = arith.constant dense<0.000000e+00> : vector<2x8xf32>
    %2 = tpu.matmul %0, %1, %cst {dimension_numbers = #tpu.dot_dimension_numbers<[1], [1], [0], [0], [0, 0, 1, 0], [], []>} : vector<2x32xf32>, vector<8x32xf32>, vector<2x8xf32> -> vector<2x8xf32>
    %c0_3 = arith.constant 0 : index
    %c0_4 = arith.constant 0 : index
    %3 = vector.load %arg3[%c0_3, %c0_4] : memref<2x1xf32, #tpu.memory_space<vmem>>, vector<2x1xf32>
    %4 = vector.broadcast %3 : vector<2x1xf32> to vector<2x8xf32>
    %5 = arith.addf %2, %4 : vector<2x8xf32>
    %c0_5 = arith.constant 0 : index
    %c0_6 = arith.constant 0 : index
    %6 = vector.load %arg4[%c0_5, %c0_6] : memref<2x8xf32, #tpu.memory_space<vmem>>, vector<2x8xf32>
    tpu.vector_store %arg4[%c0_5, %c0_6], %5 {strides = array<i32>} : memref<2x8xf32, #tpu.memory_space<vmem>>, vector<2x8xf32>,
    return
  }
  func.func @transform_0(%arg0: i32) -> (i32, i32) {
    %c0_i32 = arith.constant 0 : i32
    %c0_i32_0 = arith.constant 0 : i32
    return %arg0, %c0_i32 : i32, i32
  }
  func.func @transform_1(%arg0: i32) -> (i32, i32) {
    %c0_i32 = arith.constant 0 : i32
    %c0_i32_0 = arith.constant 0 : i32
    %c0_i32_1 = arith.constant 0 : i32
    return %c0_i32, %c0_i32_0 : i32, i32
  }
  func.func @transform_2(%arg0: i32) -> (i32, i32) {
    %c0_i32 = arith.constant 0 : i32
    %c0_i32_0 = arith.constant 0 : i32
    %c0_i32_1 = arith.constant 0 : i32
    return %c0_i32, %c0_i32_0 : i32, i32
  }
  func.func @transform_3(%arg0: i32) -> (i32, i32) {
    %c0_i32 = arith.constant 0 : i32
    %c0_i32_0 = arith.constant 0 : i32
    return %c0_i32, %arg0 : i32, i32
  }
}

</mosaic_0001>

<bundles_post_ra>
// kernel: tpu_custom_call.1
= control target key start
LH: loop header
LB: loop body
LE: loop exit
PB: predicated region body
PF: predicated region fallthrough
CT: control target
= control target key end

     0   :  { %8 = vsyncpa [#allocation3], 0  ;;  %s247_s0 = inlined_call_operand.hbm [shape: f32[8,32], index: 0, kind: input, shape index: {}]   ;;  %s248_s1 = inlined_call_operand.vmem [shape: f32[2,32], index: 1, kind: input, shape index: {}]   ;;  %s249_s2 = inlined_call_operand.vmem [shape: f32[2,1], index: 2, kind: input, shape index: {}]   ;;  %s250_s3 = inlined_call_operand.hbm [shape: f32[2,8], index: 3, kind: output, shape index: {}]  }
   0x1   :  { %9 = vsyncpa [#allocation4], 0  ;;  %s192_s12 = smov [#allocation2]   ;;  %s144_s16 = scalar_lea.hbm %s247_s0, 128 }
   0x2   :  { %s16_s13 = sshll.u32 %s192_s12, 4  ;;  %p145_p0 = scmp.ne.s32.totalorder %s247_s0, %s144_s16  ;;  %s17_s13 = int_to_ptr.vmem [resolvable:$true] %s16_s13 }
   0x3   :  { %p148_p1 = scmp.lt.u32.totalorder %s144_s16, %s247_s0 }
   0x5   :  { %p150_p2 = pnand %p148_p1, %p145_p0 }
   0x7   :  { %153 = shalt.err (!%p150_p2)
}
   0x8   :  { %s154_s21 = scalar_lea.vmem %s17_s13, 128  ;;  %p159_p4 = scmp.lt.s32.totalorder %s17_s13, %s17_s13 }
   0x9   :  { %p155_p3 = scmp.ne.s32.totalorder %s17_s13, %s154_s21  ;;  %p160_p5 = scmp.lt.s32.totalorder %s154_s21, %s154_s21 }
   0xb   :  { %p161_p6 = por %p160_p5, %p159_p4 }
   0xd   :  { %p162_p7 = pnand %p161_p6, %p155_p3 }
   0xf   :  { %165 = shalt.err (!%p162_p7)
}
  0x10   :  { %19 = dma.hbm_to_vmem [thread:$0]  %s247_s0, 128, %s17_s13, [#allocation3]  }
  0x11   :  { %188 = dma.done.wait [#allocation3], 128  }
  0x12   :  { %189 = vsyncadd [#allocation3], 4294967168  ;;  %v193_v0 = vmov 0.0   ;;  %vm194_vm0 = vmmov 0   ;;  %v195_v1 = vmov 0   ;;  %vm35_vm1 = vcmask 261120  }
  0x13   :  { %133 = vmatprep.subr.mxu0 %v193_v0  ;;  %135 = vmatprep.mubr.msk.f32.mxu0 %vm194_vm0, %v193_v0  ;;  %v28_v2 = vld [vmem:[#allocation2] sm:$0xff]  ;;  %s196_s0 = smov [#allocation5]   ;;  %vm112_vm2 = vcmask 58368  }
  0x14   :  { %143 = vset.pattern.permute.xlu0 %v195_v1  ;;  %v29_v3 = vld [vmem:[%s249_s2] sm:$0x3]  ;;  %134 = vmatpush3.xpose.msk.msra.mxu0 %vm35_vm1, %v28_v2  ;;  %s120_s28 = sshll.u32 %s196_s0, 4  ;;  %s121_s28 = int_to_ptr.vmem [resolvable:$true] %s120_s28 }
  0x15   :  { %v27_v4 = vld [vmem:[%s248_s1] sm:$0x3]  ;;  %32 = vperm.xlu0 %143, %v29_v3   ;;  %s166_s29 = scalar_lea.vmem %s121_s28, 32  ;;  %p171_p9 = scmp.lt.s32.totalorder %s121_s28, %s121_s28 }
  0x16   :  { %p167_p8 = scmp.ne.s32.totalorder %s121_s28, %s166_s29  ;;  %p172_p10 = scmp.lt.s32.totalorder %s166_s29, %s166_s29 }
  0x17   :  { %136 = vmatmul.mubr.msk.f32.vlgmr.msra.gmra.mrb[0].mxu0 %vm35_vm1, %v27_v4 }
  0x18   :  { %p173_p11 = por %p172_p10, %p171_p9 }
  0x1a   :  { %p174_p12 = pnand %p173_p11, %p167_p8 }
  0x94   :  { %v33_v5 = vpop.permute.xlu0 %32 }
  0xea   :  { %v108_v6 = vpop.f32.mrb[0].mxu0 }
  0xeb   :  { %v109_v7 = vadd.f32 %v108_v6, %v33_v5  ;;  %v137_v8 = vpop.f32.mrb[1].mxu0 }
  0xed   :  { %113 = vst.msk [vmem:[#allocation5] sm:$0x3] %vm112_vm2, %v109_v7 }
  0xee   :  { %177 = shalt.err (!%p174_p12)
}
  0xef   :  { %s178_s30 = scalar_lea.hbm %s250_s3, 32 }
  0xf0   :  { %p179_p13 = scmp.ne.s32.totalorder %s250_s3, %s178_s30  ;;  %p182_p0 = scmp.lt.u32.totalorder %s178_s30, %s250_s3 }
  0xf2   :  { %p184_p1 = pnand %p182_p0, %p179_p13 }
  0xf4   :  { %187 = shalt.err (!%p184_p1)
}
  0xf5   :  { %123 = dma.vmem_to_hbm [thread:$0]  %s121_s28, 32, %s250_s3, [#allocation4]  }
  0xf6   :  { %190 = dma.done.wait [#allocation4], 32  }
  0xf7   :  { %191 = vsyncadd [#allocation4], 4294967264 }
  0xf8   :  { %127 = vsyncpa [#allocation3], 1 }
  0xf9   :  { %128 = vsyncpa [#allocation4], 1 }

</bundles_post_ra>
